<compile_context>
chip_gen: v7x
topology: tpu7x:2x2x1
jax: 0.10.0
libtpu: 0.0.40
codegen_flags: <defaults>
</compile_context>

<pallas_src>
import jax
import jax.numpy as jnp
from jax.experimental import pallas as pl
from jax.experimental.pallas import tpu as pltpu

LANE = 128
SUBLANE = 8
TILE_BYTES_PER_INPUT = 2 * 1024 * 1024   # ~2 MiB per input tile (per buffer)
DEFAULT_MIN_PALLAS_ELEMS = 1 << 18       # below this, plain-JAX fallback


def _make_content_loss_kernel(tile_rows, valid_rows, need_mask):
    """Kernel computing a per-block (8,128) partial sum of (x - t)^2."""

    def kernel(x_ref, t_ref, psum_ref):
        # x_ref / t_ref: (tile_rows, 128); psum_ref: (8, 128) per-block slot.
        d = x_ref[...].astype(jnp.float32) - t_ref[...].astype(jnp.float32)
        dd = d * d
        if need_mask:
            # Last block overhangs the array: rows >= valid_rows are undefined
            # VMEM contents and must be zeroed before the reduction. The mask
            # is all-true for non-last blocks, so no branch is needed.
            row_ids = (
                pl.program_id(0) * tile_rows
                + jax.lax.broadcasted_iota(jnp.int32, (tile_rows, LANE), 0)
            )
            dd = jnp.where(row_ids < valid_rows, dd, 0.0)
        # VPU-only reduction: fold the row-block axis down to one (8,128)
        # vreg; the reshape is (8,128)-tile aligned (tile_rows % 8 == 0) so it
        # is a pure layout view. The expensive cross-lane reduce is deferred
        # to plain JAX (done once on num_blocks*8*128 floats).
        psum_ref[...] = jnp.sum(
            dd.reshape(tile_rows // SUBLANE, SUBLANE, LANE), axis=0
        )

    return kernel


def content_loss_forward(x, target, *, min_pallas_elems=DEFAULT_MIN_PALLAS_ELEMS):
    """ContentLoss.forward: returns (input_unchanged, mse_loss(input, target))."""
    assert x.shape == target.shape
    total = x.size

    # Latency-bound sizes: a fused XLA reduce beats a kernel launch.
    if total < min_pallas_elems:
        d = x.astype(jnp.float32) - target.astype(jnp.float32)
        return x, jnp.mean(d * d)

    # Lane-dense (rows, 128) slab. For contiguous inputs ravel+reshape is a
    # metadata-only bitcast; no HBM copy.
    rows = pl.cdiv(total, LANE)
    padded_total = rows * LANE

    xf = jnp.ravel(x)
    tf = jnp.ravel(target)
    if padded_total != total:
        # Rare path (total not a multiple of 128): minimal zero-pad (<128
        # elems) so the 2D reshape is legal. Padded zeros contribute 0 to the
        # squared-difference sum; the mean divides by the true element count.
        pad = padded_total - total
        xf = jnp.pad(xf, (0, pad))
        tf = jnp.pad(tf, (0, pad))
    x2 = xf.reshape(rows, LANE)
    t2 = tf.reshape(rows, LANE)

    # Dtype-aware tile sizing: cap per-input tile at ~2 MiB so
    # 2 inputs x 2 double-buffers = 8 MiB fits every generation's default
    # scoped-VMEM limit (v5e: 16 MiB) without a vmem_limit_bytes override.
    itemsize = max(jnp.dtype(x.dtype).itemsize, jnp.dtype(target.dtype).itemsize)
    max_tile_rows = max(
        SUBLANE, (TILE_BYTES_PER_INPUT // (LANE * itemsize)) // SUBLANE * SUBLANE
    )
    # v7x has 2 TensorCores: keep >= 2 blocks whenever possible so the
    # "parallel" grid axis can actually be sharded across them.
    half_rows = -(-rows // 2)
    half_rows = -(-half_rows // SUBLANE) * SUBLANE
    tile_rows = min(max_tile_rows, max(SUBLANE, half_rows))

    num_blocks = pl.cdiv(rows, tile_rows)
    need_mask = (rows % tile_rows) != 0   # last block overhangs the array

    kernel = _make_content_loss_kernel(tile_rows, rows, need_mask)

    out_bytes = num_blocks * SUBLANE * LANE * 4
    cost = pl.CostEstimate(
        flops=3 * total,
        transcendentals=0,
        bytes_accessed=total * jnp.dtype(x.dtype).itemsize
        + total * jnp.dtype(target.dtype).itemsize
        + out_bytes,
    )

    psums = pl.pallas_call(
        kernel,
        out_shape=jax.ShapeDtypeStruct((num_blocks, SUBLANE, LANE), jnp.float32),
        grid_spec=pl.GridSpec(
            grid=(num_blocks,),
            in_specs=[
                pl.BlockSpec((tile_rows, LANE), lambda i: (i, 0)),
                pl.BlockSpec((tile_rows, LANE), lambda i: (i, 0)),
            ],
            # Each grid block owns its own partial-sum slot -> grid axis is
            # fully independent and can be sharded across TCs.
            out_specs=pl.BlockSpec((None, SUBLANE, LANE), lambda i: (i, 0, 0)),
        ),
        compiler_params=pltpu.CompilerParams(
            dimension_semantics=("parallel",),
        ),
        cost_estimate=cost,
    )(x2, t2)

    loss = jnp.sum(psums) / jnp.float32(total)
    # ContentLoss.forward returns its input unchanged: no kernel copy needed.
    return x, loss


if __name__ == "__main__":
    key = jax.random.PRNGKey(0)
    k1, k2, k3, k4, k5, k6 = jax.random.split(key, 6)

    # (a) f32 feature map, total % 128 == 0, two blocks, no pad, no mask.
    x1 = jax.random.normal(k1, (2, 4, 16, 16), dtype=jnp.float32)
    t1 = jax.random.normal(k2, (2, 4, 16, 16), dtype=jnp.float32)
    out1, loss1 = content_loss_forward(x1, t1, min_pallas_elems=0)
    out1 = jax.block_until_ready(out1)
    loss1 = jax.block_until_ready(loss1)
    ref1 = jnp.mean((x1 - t1) ** 2)
    assert out1 is x1, "pass-through output mismatch"
    assert jnp.allclose(loss1, ref1, rtol=1e-6, atol=1e-6), "mse loss mismatch (a)"

    # (b) bf16 feature map whose row count is not a multiple of tile_rows:
    #     exercises narrow-dtype streaming + the in-kernel overhang mask.
    x2 = jax.random.normal(k3, (2, 4, 16, 12), dtype=jnp.bfloat16)
    t2 = jax.random.normal(k4, (2, 4, 16, 12), dtype=jnp.bfloat16)
    out2, loss2 = content_loss_forward(x2, t2, min_pallas_elems=0)
    loss2 = jax.block_until_ready(loss2)
    ref2 = jnp.mean((x2.astype(jnp.float32) - t2.astype(jnp.float32)) ** 2)
    assert out2 is x2, "pass-through output mismatch (b)"
    assert jnp.allclose(loss2, ref2, rtol=1e-5, atol=1e-6), "mse loss mismatch (b)"

    # (c) ragged total (not a multiple of 128): minimal-pad path.
    x3 = jax.random.normal(k5, (2, 3, 17, 19), dtype=jnp.float32)
    t3 = jax.random.normal(k6, (2, 3, 17, 19), dtype=jnp.float32)
    out3, loss3 = content_loss_forward(x3, t3, min_pallas_elems=0)
    loss3 = jax.block_until_ready(loss3)
    ref3 = jnp.mean((x3 - t3) ** 2)
    assert jnp.allclose(loss3, ref3, rtol=1e-6, atol=1e-6), "mse loss mismatch (c)"

    # (d) default threshold -> plain-JAX fallback path for tiny inputs.
    out4, loss4 = content_loss_forward(x1, t1)
    loss4 = jax.block_until_ready(loss4)
    assert jnp.allclose(loss4, ref1, rtol=1e-6, atol=1e-6), "fallback loss mismatch"

    print("KERNEL_OK")
</pallas_src>

<mosaic_0001>
module attributes {stable_mosaic.version = 11 : i64} {
  func.func @kernel(%arg0: i32, %arg1: memref<8x128xf32, #tpu.memory_space<vmem>>, %arg2: memref<8x128xf32, #tpu.memory_space<vmem>>, %arg3: memref<1x8x128xf32, #tpu.memory_space<vmem>>) attributes {dimension_semantics = [#tpu.dimension_semantics<parallel>], iteration_bounds = array<i64: 2>, scalar_prefetch = 0 : i64, scratch_operands = 0 : i64, tpu.core_type = #tpu.core_type<tc>, window_params = [{transform_indices = @transform_0, window_bounds = array<i64: 8, 128>}, {transform_indices = @transform_1, window_bounds = array<i64: 8, 128>}, {transform_indices = @transform_2, window_bounds = array<i64: 1, 8, 128>}]} {
    %c0 = arith.constant 0 : index
    %c0_0 = arith.constant 0 : index
    %0 = vector.load %arg1[%c0, %c0_0] : memref<8x128xf32, #tpu.memory_space<vmem>>, vector<8x128xf32>
    %c0_1 = arith.constant 0 : index
    %c0_2 = arith.constant 0 : index
    %1 = vector.load %arg2[%c0_1, %c0_2] : memref<8x128xf32, #tpu.memory_space<vmem>>, vector<8x128xf32>
    %2 = arith.subf %0, %1 : vector<8x128xf32>
    %3 = arith.mulf %2, %2 : vector<8x128xf32>
    %4 = vector.shape_cast %3 : vector<8x128xf32> to vector<1x8x128xf32>
    %cst = arith.constant dense<0.000000e+00> : vector<8x128xf32>
    %5 = vector.multi_reduction <add>, %4, %cst [0] : vector<1x8x128xf32> to vector<8x128xf32>
    %c0_3 = arith.constant 0 : index
    %c0_4 = arith.constant 0 : index
    %c0_5 = arith.constant 0 : index
    %6 = vector.load %arg3[%c0_3, %c0_4, %c0_5] : memref<1x8x128xf32, #tpu.memory_space<vmem>>, vector<1x8x128xf32>
    %7 = vector.shape_cast %6 : vector<1x8x128xf32> to vector<8x128xf32>
    %8 = vector.shape_cast %5 : vector<8x128xf32> to vector<1x8x128xf32>
    tpu.vector_store %arg3[%c0_3, %c0_4, %c0_5], %8 {strides = array<i32>} : memref<1x8x128xf32, #tpu.memory_space<vmem>>, vector<1x8x128xf32>,
    return
  }
  func.func @transform_0(%arg0: i32) -> (i32, i32) {
    %c0_i32 = arith.constant 0 : i32
    %c0_i32_0 = arith.constant 0 : i32
    return %arg0, %c0_i32 : i32, i32
  }
  func.func @transform_1(%arg0: i32) -> (i32, i32) {
    %c0_i32 = arith.constant 0 : i32
    %c0_i32_0 = arith.constant 0 : i32
    return %arg0, %c0_i32 : i32, i32
  }
  func.func @transform_2(%arg0: i32) -> (i32, i32, i32) {
    %c0_i32 = arith.constant 0 : i32
    %c0_i32_0 = arith.constant 0 : i32
    %c0_i32_1 = arith.constant 0 : i32
    return %arg0, %c0_i32, %c0_i32_0 : i32, i32, i32
  }
}

</mosaic_0001>

<bundles_post_ra>
// kernel: tpu_custom_call.1
= control target key start
LH: loop header
LB: loop body
LE: loop exit
PB: predicated region body
PF: predicated region fallthrough
CT: control target
= control target key end

     0   :  { %7 = vsyncpa [#allocation3], 0  ;;  %s734_s0 = inlined_call_operand.hbm [shape: f32[16,128], index: 0, kind: input, shape index: {}]   ;;  %s735_s1 = inlined_call_operand.hbm [shape: f32[16,128], index: 1, kind: input, shape index: {}]   ;;  %s736_s2 = inlined_call_operand.hbm [shape: f32[2,8,128], index: 2, kind: output, shape index: {}]  }
   0x1   :  { %9 = vsyncpa [#allocation3 + $0x1], 0 }
   0x2   :  { %10 = vsyncpa [#allocation6], 0 }
   0x3   :  { %12 = vsyncpa [#allocation6 + $0x1], 0 }
   0x4   :  { %13 = vsyncpa [#allocation4], 0 }
   0x5   :  { %15 = vsyncpa [#allocation4 + $0x1], 0  ;;  %s525_s9 = smov 0   ;;  %s527_s10 = smov 0  }
   0x6   :  { %s529_s11 = smov 0   ;;  %s531_s12 = smov 0  }
   0x7 LB: > { %s546_s13 = sadd.s32 4294967295, %s505_s12   ;;  %s309_s14 = sadd.s32 4294967294, %s505_s12   ;;  %s505_s12 = sphi %s531_s12, %s755_s12   ;;  %s501_s11 = sphi %s529_s11, %s754_s11   ;;  %s497_s10 = sphi %s527_s10, %s753_s10   ;;  %s493_s9 = sphi %s525_s9, %s752_s9  }
   0x8   : > { %s550_s15 = sadd.s32 1, %s505_s12   ;;  %s28_s16 = sadd.s32 1, %s501_s11 }
   0x9   : > { %s25_s17 = ssub.s32 %s505_s12, %s550_s15  ;;  %p35_p0 = scmp.ne.s32.totalorder %s501_s11, %s497_s10 }
   0xa   : > { %p26_p1 = scmp.eq.s32.totalorder %s25_s17, 0  ;;  %p36_p2 = scmp.eq.s32.totalorder %s505_s12, 0 }
   0xb   : > { %p41_p3 = scmp.ne.s32.totalorder %s497_s10, %s493_s9  ;;  %p42_p4 = scmp.eq.s32.totalorder %s546_s13, 0 }
   0xc   : > { %s562_s18 = scalar_select %p26_p1, %s501_s11, %s28_s16  }
   0xd   : > { %p564_p5 = por %p36_p2, %p35_p0  ;;  %p568_p6 = por %p42_p4, %p41_p3 }
   0xe   : > { %p91_p7 = scmp.eq.s32.totalorder %s546_s13, 1  ;;  %p97_p8 = scmp.eq.s32.totalorder %s309_s14, 1 }
   0xf   : > { %s740_s20 = scalar_select %p568_p6, 1, 0 }
  0x10   : > { %p341_p10 = scmp.lt.s32.totalorder %s505_s12, 2  ;;  %p575_p11 = por %p91_p7, %p35_p0 }
  0x11   : > { %p579_p12 = por %p97_p8, %p41_p3  ;;  %s584_s23 = sand.u32 1, %s501_s11  }
  0x12   : > { %s741_s21 = scalar_select %p575_p11, 1, 0 }
  0x13   : > { %s742_s22 = scalar_select %p579_p12, 1, 0 }
  0x14   : > { %s313_s24 = sshll.u32 %s505_s12, 7  ;;  %s312_s25 = sshll.u32 %s584_s23, 3 }
  0x15   : > { %s593_s28 = scalar_lea.hbm %s734_s0, %s313_s24  ;;  %s121_s29 = scalar_lea.vmem [#allocation2], %s312_s25 }
  0x16   : > { %s128_s30 = sshll.u32 %s121_s29, 4  ;;  %p599_p13 = pnand %p341_p10, %p564_p5  ;;  %s603_s30 = int_to_ptr.vmem [resolvable:$true] %s128_s30 }
  0x17   : > { %s118_s4 = scalar_lea.sflag [#allocation3], %s584_s23  ;;  %s375_s5 = scalar_lea.hbm %s593_s28, 128 }
  0x18   : > { %p376_p2 = scmp.ne.s32.totalorder %s593_s28, %s375_s5  ;;  %p377_p3 = pneg %p599_p13 }
  0x19   : > { %s380_s8 = scalar_lea.hbm %s734_s0, 256  ;;  %p381_p5 = scmp.lt.u32.totalorder %s593_s28, %s734_s0 }
  0x1a   : > { %p378_p4 = pnand %p377_p3, %p376_p2  ;;  %p382_p8 = scmp.lt.u32.totalorder %s380_s8, %s375_s5 }
  0x1b   : > { %p384_p9 = scmp.lt.u32.totalorder %s375_s5, %s593_s28 }
  0x1c   : > { %p379_p7 = pneg %p378_p4  ;;  %p383_p10 = por %p382_p8, %p381_p5 }
  0x1e   : > { %p385_p0 = por %p384_p9, %p383_p10 }
  0x20   : > { %p386_p1 = pnand %p385_p0, %p379_p7 }
  0x22   : > { %389 = shalt.err (!%p386_p1)
}
  0x23   : > { %s390_s17 = scalar_lea.vmem %s603_s30, 128  ;;  %s507_s19 = smov [#allocation2]  }
  0x24   : > { %p391_p2 = scmp.ne.s32.totalorder %s603_s30, %s390_s17  ;;  %s395_s26 = sshll.u32 %s507_s19, 4  ;;  %s396_s26 = int_to_ptr.vmem [resolvable:$false] %s395_s26 }
  0x25   : > { %s397_s27 = scalar_lea.vmem %s396_s26, 256  ;;  %p398_p11 = scmp.lt.s32.totalorder %s603_s30, %s396_s26 }
  0x26   : > { %p393_p4 = pnand %p391_p2, %p377_p3  ;;  %p399_p5 = scmp.lt.s32.totalorder %s397_s27, %s390_s17 }
  0x28   : > { %p394_p12 = pneg %p393_p4  ;;  %p400_p8 = por %p399_p5, %p398_p11 }
  0x2a   : > { %p401_p9 = pnand %p400_p8, %p394_p12 }
  0x2c   : > { %404 = shalt.err (!%p401_p9)
}
  0x2d   : > { %333 = dma.hbm_to_vmem [thread:$0]  (!%p599_p13), %s593_s28, 128, %s603_s30, %s118_s4  }
  0x2e   : > { %p744_p0 = scmp.lt.s32.totalorder %s505_s12, 3  ;;  %p745_p1 = scmp.ge.s32.totalorder %s505_s12, 1 }
  0x2f   : > { %s646_s7 = scalar_lea.hbm %s735_s1, %s313_s24  ;;  %s139_s8 = scalar_lea.vmem [#allocation5], %s312_s25 }
  0x30   : > { %p637_p7 = pnand %p745_p1, %p744_p0  ;;  %s146_s14 = sshll.u32 %s139_s8, 4  ;;  %s147_s14 = int_to_ptr.vmem [resolvable:$true] %s146_s14 }
  0x31   : > { %s136_s28 = scalar_lea.sflag [#allocation6], %s584_s23  ;;  %s405_s30 = scalar_lea.hbm %s646_s7, 128 }
  0x32   : > { %s746_s29 = scalar_select %p637_p7, 1, 0 }
  0x33   : > { %p406_p11 = scmp.ne.s32.totalorder %s646_s7, %s405_s30  ;;  %s410_s24 = scalar_lea.hbm %s735_s1, 256 }
  0x34   : > { %p411_p2 = scmp.lt.u32.totalorder %s646_s7, %s735_s1  ;;  %p412_p4 = scmp.lt.u32.totalorder %s410_s24, %s405_s30 }
  0x35   : > { %p408_p12 = pnand %p406_p11, %p377_p3  ;;  %p414_p8 = scmp.lt.u32.totalorder %s405_s30, %s646_s7 }
  0x36   : > { %p413_p5 = por %p412_p4, %p411_p2 }
  0x37   : > { %p409_p10 = pneg %p408_p12 }
  0x38   : > { %p415_p9 = por %p414_p8, %p413_p5 }
  0x3a   : > { %p416_p0 = pnand %p415_p9, %p409_p10 }
  0x3c   : > { %419 = shalt.err (!%p416_p0)
}
  0x3d   : > { %s420_s23 = scalar_lea.vmem %s147_s14, 128  ;;  %s508_s25 = smov [#allocation5]  }
  0x3e   : > { %p421_p1 = scmp.ne.s32.totalorder %s147_s14, %s420_s23  ;;  %s425_s26 = sshll.u32 %s508_s25, 4  ;;  %s426_s26 = int_to_ptr.vmem [resolvable:$false] %s425_s26 }
  0x3f   : > { %s427_s27 = scalar_lea.vmem %s426_s26, 256  ;;  %p428_p6 = scmp.lt.s32.totalorder %s147_s14, %s426_s26 }
  0x40   : > { %p423_p11 = pnand %p421_p1, %p377_p3  ;;  %p429_p7 = scmp.lt.s32.totalorder %s427_s27, %s420_s23 }
  0x42   : > { %p424_p12 = pneg %p423_p11  ;;  %p430_p2 = por %p429_p7, %p428_p6 }
  0x44   : > { %p431_p4 = pnand %p430_p2, %p424_p12 }
  0x46   : > { %434 = shalt.err (!%p431_p4)
}
  0x47   : > { %336 = dma.hbm_to_vmem [thread:$0]  (!%p599_p13), %s646_s7, 128, %s147_s14, %s136_s28  }
  0x48   : > { %p747_p10 = scmp.ne.s32.totalorder %s746_s29, 0 }
  0x49   : > { %s673_s5 = sand.u32 (!%p747_p10), 1, %s497_s10   ;;  %p748_p3 = scmp.ne.s32.totalorder (!%p747_p10), %s740_s20, 0 }
  0x4a   : > { %155 = sbr.rel (%p747_p10) target bundleno = 110 (0x6e), region = 28  ;;  %s317_s6 = sshll.u32 (!%p747_p10), %s673_s5, 3 }
  0x4b   : > { %s158_s8 = scalar_lea.sflag (!%p747_p10), [#allocation3], %s673_s5  ;;  %s161_s30 = scalar_lea.vmem (!%p747_p10), [#allocation2], %s317_s6 }
  0x51   : > { %480 = dma.done.wait (%p748_p3), %s158_s8, 128  }
  0x52   : > { %482 = vsyncadd (%p748_p3), %s158_s8, 4294967168  ;;  %s167_s3 = scalar_lea.sflag [#allocation6], %s673_s5  ;;  %s170_s7 = scalar_lea.vmem [#allocation5], %s317_s6 }
  0x53   : > { %484 = dma.done.wait (%p748_p3), %s167_s3, 128  }
  0x54   : > { %486 = vsyncadd (%p748_p3), %s167_s3, 4294967168  ;;  %v196_v0 = vld [vmem:[%s161_s30] sm:$0xff]  ;;  %v197_v1 = vld [vmem:[%s170_s7] sm:$0xff]  ;;  %s195_s29 = scalar_lea.vmem [#allocation7], %s317_s6  ;;  %s321_s28 = sshll.u32 %s546_s13, 7 }
  0x55   : > { %s216_s14 = sshll.u32 %s195_s29, 4  ;;  %v198_v2 = vsub.f32 %v196_v0, %v197_v1  ;;  %s692_s20 = scalar_lea.hbm %s736_s2, %s321_s28  ;;  %s687_s14 = int_to_ptr.vmem [resolvable:$true] %s216_s14 }
  0x56   : > { %s203_s24 = scalar_lea.sflag [#allocation4], %s673_s5  ;;  %s435_s17 = scalar_lea.vmem %s687_s14, 128 }
  0x57   : > { %v199_v3 = vmul.f32 %v198_v2, %v198_v2  ;;  %p436_p6 = scmp.ne.s32.totalorder %s687_s14, %s435_s17  ;;  %p749_p13 = scmp.ne.s32.totalorder %s741_s21, 0 }
  0x58   : > { %s509_s13 = smov [#allocation7]  }
  0x59   : > { %201 = vst [vmem:[%s195_s29] sm:$0xff] %v199_v3  ;;  %p437_p7 = pnand %p436_p6, %p749_p13  ;;  %s439_s19 = sshll.u32 %s509_s13, 4  ;;  %s440_s19 = int_to_ptr.vmem [resolvable:$false] %s439_s19 }
  0x5a   : > { %s441_s23 = scalar_lea.vmem %s440_s19, 256  ;;  %p442_p8 = scmp.lt.s32.totalorder %s687_s14, %s440_s19 }
  0x5b   : > { %p438_p5 = pneg %p437_p7  ;;  %p443_p9 = scmp.lt.s32.totalorder %s441_s23, %s435_s17 }
  0x5d   : > { %p444_p0 = por %p443_p9, %p442_p8 }
  0x5f   : > { %p445_p1 = pnand %p444_p0, %p438_p5 }
  0x61   : > { %448 = shalt.err (!%p445_p1)
}
  0x62   : > { %s449_s25 = scalar_lea.hbm %s692_s20, 128  ;;  %s453_s5 = scalar_lea.hbm %s736_s2, 256 }
  0x63   : > { %p450_p11 = scmp.ne.s32.totalorder %s692_s20, %s449_s25  ;;  %p454_p4 = scmp.lt.u32.totalorder %s692_s20, %s736_s2 }
  0x64   : > { %p455_p10 = scmp.lt.u32.totalorder %s453_s5, %s449_s25  ;;  %p457_p6 = scmp.lt.u32.totalorder %s449_s25, %s692_s20 }
  0x65   : > { %p451_p12 = pnand %p450_p11, %p749_p13 }
  0x66   : > { %p456_p3 = por %p455_p10, %p454_p4 }
  0x67   : > { %p452_p2 = pneg %p451_p12 }
  0x68   : > { %p458_p7 = por %p457_p6, %p456_p3 }
  0x6a   : > { %p459_p5 = pnand %p458_p7, %p452_p2 }
  0x6c   : > { %462 = shalt.err (!%p459_p5)
}
  0x6d   : > { %328 = dma.vmem_to_hbm [thread:$0]  (%p749_p13), %s687_s14, 128, %s692_s20, %s203_s24  }
  0x6e PF: > { %s228_s30 = sand.u32 1, %s493_s9   ;;  %p750_p8 = scmp.ne.s32.totalorder %s742_s22, 0 }
  0x6f   : > { %p751_p9 = scmp.ge.s32.totalorder %s505_s12, 2  ;;  %s229_s3 = scalar_lea.sflag [#allocation4], %s228_s30 }
  0x71   : > { %p338_p0 = pnand %p751_p9, %p750_p8 }
  0x73   : > { %488 = dma.done.wait (!%p338_p0), %s229_s3, 128  }
  0x74   : > { %490 = vsyncadd (!%p338_p0), %s229_s3, 4294967168  ;;  %p18_p1 = scmp.ge.s32.totalorder %s550_s15, 4   ;;  %s752_s9 = smov %s497_s10 }
  0x75   : > { %s753_s10 = smov %s501_s11  ;;  %s754_s11 = smov %s562_s18 }
  0x76   : > { %s755_s12 = smov %s550_s15  ;;  %20 = sbr.rel (!%p18_p1) target bundleno = 7 (0x7), region = 86 }
  0x7d   :  { %234 = vsyncpa [#allocation3], 1 }
  0x7e   :  { %236 = vsyncpa [#allocation3 + $0x1], 1 }
  0x7f   :  { %237 = vsyncpa [#allocation6], 1 }
  0x80   :  { %239 = vsyncpa [#allocation6 + $0x1], 1 }
  0x81   :  { %240 = vsyncpa [#allocation4], 1 }
  0x82   :  { %242 = vsyncpa [#allocation4 + $0x1], 1 }

</bundles_post_ra>
